<compile_context>
chip_gen: v7x
topology: tpu7x:2x2x1
jax: 0.10.0
libtpu: 0.0.40
codegen_flags: <defaults>
</compile_context>

<pallas_src>
import functools

import jax
import jax.numpy as jnp
import numpy as np
from jax.experimental import pallas as pl
from jax.experimental.pallas import tpu as pltpu

# ---------------- problem sizes (small, consistent with the module) ----------------
A = 2              # number of agents
B = 4              # batch size per agent
AB = A * B         # = 8, fills the 8-sublane dimension of a vreg
D_IN = 16          # input_dim (same for every agent so outputs stack cleanly)
H = 32             # hidden_dims = [H, H]  -> GRU hidden dim = H
D_OUT = 8          # output_dim
AD_IN = A * D_IN   # 32  : cross-agent block-diag input width
AH = A * H         # 64  : cross-agent block-diag hidden width
AD_OUT = A * D_OUT # 16
G4 = 4 * AH        # 256 : fused gate width [r | z | gx_n | gh_n], agent-minor
OUT_PAD = 128      # lane-dense combined output width: [h_new(64) | out(16) | zeros]
EPS = 1e-5         # nn.LayerNorm default eps
LANE = 128

# --------------- vec-slab layout: every segment starts at a 128-lane boundary -------
_VEC_SEGMENTS = [
    ("g_in", AD_IN), ("b_in", AD_IN),
    ("b_pre", AH), ("g_pre", AH), ("be_pre", AH),
    ("b_gru", G4),
    ("g_gru", AH), ("be_gru", AH),
    ("b_mid", AH), ("g_mid", AH), ("be_mid", AH),
    ("b_out", AD_OUT),
]
_VEC_OFFSETS = {}
_off = 0
for _name, _w in _VEC_SEGMENTS:
    _VEC_OFFSETS[_name] = (_off, _w)
    _off += (-(-_w // LANE)) * LANE          # pad each segment to a multiple of 128
VEC_WIDTH = _off                             # 1664 lanes -> (8, 1664) f32 ≈ 52 KiB


# ---------------------------------- Pallas kernel ----------------------------------
def _fused_kernel(x_ref, h_ref, vec_ref, w_pre_ref, w_gru_ref, w_mid_ref, w_out_ref,
                  out_ref):
    f32 = jnp.float32
    x = x_ref[...]          # (AB, AD_IN)  block-diagonal per agent
    h = h_ref[...]          # (AB, AH)     block-diagonal per agent
    vec = vec_ref[...]      # (AB, VEC_WIDTH)  LN params + biases (128-lane aligned)

    def seg(name):
        o, w = _VEC_OFFSETS[name]
        return vec[:, o:o + w]

    def layernorm(v, gamma, beta, d):
        # one-pass sums (off-block lanes are zero so they contribute nothing);
        # 2-op epilogue: v*s + (beta - mu*s) with s = gamma*rstd; gamma/beta are zero
        # in the off-block lanes, so the output stays block-diagonal.
        s1 = jnp.sum(v, axis=-1, keepdims=True)
        s2 = jnp.sum(v * v, axis=-1, keepdims=True)
        mu = s1 * (1.0 / d)
        var = s2 * (1.0 / d) - mu * mu
        s = gamma * jax.lax.rsqrt(var + EPS)
        return v * s + (beta - mu * s)

    # RNNBase.norm
    x = layernorm(x, seg("g_in"), seg("b_in"), D_IN)

    # pre_rnn: Linear -> LayerNorm -> ReLU   (one block-diagonal matmul for all agents)
    pre = jnp.dot(x, w_pre_ref[...], preferred_element_type=f32) + seg("b_pre")
    pre = jnp.maximum(layernorm(pre, seg("g_pre"), seg("be_pre"), H), 0.0)

    # GRUCell (PyTorch semantics) -- single fused matmul for all agents & all gates:
    #   [pre | h] (8,128) @ W (128,256) -> [r_pre | z_pre | gx_n | gh_n]
    # r/z biases are pre-summed (b_ih+b_hh) in the packed "b_gru" segment.
    gates = jnp.dot(jnp.concatenate([pre, h], axis=-1), w_gru_ref[...],
                    preferred_element_type=f32) + seg("b_gru")        # (AB, G4)
    r = jax.nn.sigmoid(gates[:, :AH])
    z = jax.nn.sigmoid(gates[:, AH:2 * AH])
    n = jnp.tanh(gates[:, 2 * AH:3 * AH] + r * gates[:, 3 * AH:])
    h_new = (1.0 - z) * n + z * h

    # GRULayer.norm
    h_new = layernorm(h_new, seg("g_gru"), seg("be_gru"), H)

    # post_rnn: FCLayer(H, H, LN, ReLU) then FCLayer(H, D_OUT) -- separate weight slabs
    y = jnp.dot(h_new, w_mid_ref[...], preferred_element_type=f32) + seg("b_mid")
    y = jnp.maximum(layernorm(y, seg("g_mid"), seg("be_mid"), H), 0.0)
    out = jnp.dot(y, w_out_ref[...], preferred_element_type=f32) + seg("b_out")

    # Single unmasked lane-dense store: [h_new (64) | out (16) | zero pad (48)]
    pad = jnp.zeros((AB, OUT_PAD - AH - AD_OUT), f32)
    out_ref[...] = jnp.concatenate([h_new, out, pad], axis=-1).astype(out_ref.dtype)


# -------------------------- block-diagonal layout helpers ---------------------------
def _to_block_diag(v):
    """(A, B, W) -> (A*B, A*W): agent a's rows carry its features in column block a."""
    eyeA = jnp.eye(A, dtype=v.dtype)
    return jnp.einsum("abw,ac->abcw", v, eyeA).reshape(AB, A * v.shape[-1])


def _from_block_diag(v, w):
    """(A*B, A*W) -> (A, B, W): pick each agent's own column block."""
    v4 = v.reshape(A, B, A, w)
    return jnp.stack([v4[a, :, a, :] for a in range(A)], axis=0)


def multi_agent_forward(inputs, hiddens, kparams):
    """inputs: (A,B,D_IN), hiddens: (A,B,H) -> (outs (A,B,D_OUT), new_hiddens (A,B,H))."""
    x_bd = _to_block_diag(inputs)     # (8, 32)
    h_bd = _to_block_diag(hiddens)    # (8, 64)
    operands = (x_bd, h_bd, kparams["vec"], kparams["w_pre"], kparams["w_gru"],
                kparams["w_mid"], kparams["w_out"])
    vmem = pl.BlockSpec(memory_space=pltpu.MemorySpace.VMEM)
    packed = pl.pallas_call(
        _fused_kernel,
        out_shape=jax.ShapeDtypeStruct((AB, OUT_PAD), jnp.float32),
        in_specs=[vmem] * len(operands),
        out_specs=vmem,
    )(*operands)
    new_hiddens = _from_block_diag(packed[:, :AH], H)
    outs = _from_block_diag(packed[:, AH:AH + AD_OUT], D_OUT)
    return outs, new_hiddens


# ------------------------------ parameter construction ------------------------------
def make_logical_params(key):
    """Per-agent logical parameters (matches the PyTorch module's init scheme)."""
    orth = jax.nn.initializers.orthogonal(scale=np.sqrt(2.0))
    kp, kih, khh, kmid, kout = jax.random.split(key, 5)
    bound = 1.0 / np.sqrt(H)
    G3 = 3 * H

    def stack(fn):
        return jnp.stack([fn(a) for a in range(A)], axis=0)

    params = {
        # LayerNorms: gamma=1, beta=0 (nn.LayerNorm default init)
        "g_in": jnp.ones((A, D_IN), jnp.float32), "b_in": jnp.zeros((A, D_IN), jnp.float32),
        "g_pre": jnp.ones((A, H), jnp.float32), "be_pre": jnp.zeros((A, H), jnp.float32),
        "g_gru": jnp.ones((A, H), jnp.float32), "be_gru": jnp.zeros((A, H), jnp.float32),
        "g_mid": jnp.ones((A, H), jnp.float32), "be_mid": jnp.zeros((A, H), jnp.float32),
        # Linear layers: orthogonal(gain=sqrt(2)), zero bias (per _init_layer);
        # stored transposed as (in_dim, out_dim).
        "w_pre": stack(lambda a: orth(jax.random.fold_in(kp, a), (D_IN, H)).astype(jnp.float32)),
        "b_pre": jnp.zeros((A, H), jnp.float32),
        "w_mid": stack(lambda a: orth(jax.random.fold_in(kmid, a), (H, H)).astype(jnp.float32)),
        "b_mid": jnp.zeros((A, H), jnp.float32),
        "w_out": stack(lambda a: orth(jax.random.fold_in(kout, a), (H, D_OUT)).astype(jnp.float32)),
        "b_out": jnp.zeros((A, D_OUT), jnp.float32),
        # GRUCell: uniform(-1/sqrt(H), 1/sqrt(H)); gate columns ordered [r | z | n].
        "w_ih": stack(lambda a: jax.random.uniform(
            jax.random.fold_in(kih, a), (H, G3), jnp.float32, -bound, bound)),
        "b_ih": stack(lambda a: jax.random.uniform(
            jax.random.fold_in(kih, a + 100), (G3,), jnp.float32, -bound, bound)),
        "w_hh": stack(lambda a: jax.random.uniform(
            jax.random.fold_in(khh, a), (H, G3), jnp.float32, -bound, bound)),
        "b_hh": stack(lambda a: jax.random.uniform(
            jax.random.fold_in(khh, a + 100), (G3,), jnp.float32, -bound, bound)),
    }
    return params


def pack_params(p):
    """Pack logical per-agent params into the 5 kernel operands (cross-agent block-diag)."""
    f32 = jnp.float32
    eyeA = jnp.eye(A, dtype=f32)

    def rows_bd(v):     # (A, W) -> (A, A*W): agent a's params in its own column block
        return jnp.einsum("aw,ac->acw", v, eyeA).reshape(A, A * v.shape[-1])

    # Fused GRU bias: gate-major / agent-minor columns, r/z halves pre-summed.
    b_fused = jnp.zeros((A, 4, A, H), f32)
    for a in range(A):
        b_fused = b_fused.at[a, 0, a, :].set(p["b_ih"][a, :H] + p["b_hh"][a, :H])
        b_fused = b_fused.at[a, 1, a, :].set(p["b_ih"][a, H:2 * H] + p["b_hh"][a, H:2 * H])
        b_fused = b_fused.at[a, 2, a, :].set(p["b_ih"][a, 2 * H:])
        b_fused = b_fused.at[a, 3, a, :].set(p["b_hh"][a, 2 * H:])
    b_gru_rows = b_fused.reshape(A, G4)                       # (A, 256)

    seg_rows = {
        "g_in": rows_bd(p["g_in"]), "b_in": rows_bd(p["b_in"]),
        "b_pre": rows_bd(p["b_pre"]), "g_pre": rows_bd(p["g_pre"]), "be_pre": rows_bd(p["be_pre"]),
        "b_gru": b_gru_rows,
        "g_gru": rows_bd(p["g_gru"]), "be_gru": rows_bd(p["be_gru"]),
        "b_mid": rows_bd(p["b_mid"]), "g_mid": rows_bd(p["g_mid"]), "be_mid": rows_bd(p["be_mid"]),
        "b_out": rows_bd(p["b_out"]),
    }
    pieces = []
    for name, w in _VEC_SEGMENTS:
        v = seg_rows[name]
        assert v.shape == (A, w)
        pad = _VEC_OFFSETS[name][0] + (-(-w // LANE)) * LANE - _VEC_OFFSETS[name][0] - w
        if pad:
            v = jnp.concatenate([v, jnp.zeros((A, pad), f32)], axis=-1)
        pieces.append(v)
    vec = jnp.repeat(jnp.concatenate(pieces, axis=-1), B, axis=0)   # (AB, VEC_WIDTH)
    assert vec.shape == (AB, VEC_WIDTH)

    def bd_weight(w):   # (A, K, N) -> (A*K, A*N) block-diagonal
        return jnp.einsum("akn,ac->akcn", w, eyeA).reshape(A * w.shape[1], A * w.shape[2])

    w_pre = bd_weight(p["w_pre"])    # (32, 64)
    w_mid = bd_weight(p["w_mid"])    # (64, 64)
    w_out = bd_weight(p["w_out"])    # (64, 16)

    # Fused GRU weight: rows = [pre_a0 | pre_a1 | h_a0 | h_a1],
    # cols = gate-major / agent-minor: [r | z | gx_n | gh_n], each (A*H) wide.
    Wg = jnp.zeros((2, A, H, 4, A, H), f32)
    for a in range(A):
        Wg = Wg.at[0, a, :, 0, a, :].set(p["w_ih"][a, :, :H])          # pre -> r
        Wg = Wg.at[0, a, :, 1, a, :].set(p["w_ih"][a, :, H:2 * H])     # pre -> z
        Wg = Wg.at[0, a, :, 2, a, :].set(p["w_ih"][a, :, 2 * H:])      # pre -> gx_n
        Wg = Wg.at[1, a, :, 0, a, :].set(p["w_hh"][a, :, :H])          # h   -> r
        Wg = Wg.at[1, a, :, 1, a, :].set(p["w_hh"][a, :, H:2 * H])     # h   -> z
        Wg = Wg.at[1, a, :, 3, a, :].set(p["w_hh"][a, :, 2 * H:])      # h   -> gh_n
    w_gru = Wg.reshape(2 * AH, G4)                                     # (128, 256)

    return {"vec": vec, "w_pre": w_pre, "w_gru": w_gru, "w_mid": w_mid, "w_out": w_out}


# ----------------------------- pure-JAX reference check -----------------------------
def reference_forward(inputs, hiddens, p):
    def ln(v, g, b):
        mu = jnp.mean(v, axis=-1, keepdims=True)
        var = jnp.mean((v - mu) ** 2, axis=-1, keepdims=True)
        return (v - mu) * jax.lax.rsqrt(var + EPS) * g + b

    outs, hs = [], []
    for a in range(A):
        x = ln(inputs[a], p["g_in"][a], p["b_in"][a])
        pre = x @ p["w_pre"][a] + p["b_pre"][a]
        pre = jnp.maximum(ln(pre, p["g_pre"][a], p["be_pre"][a]), 0.0)
        h = hiddens[a]
        gx = pre @ p["w_ih"][a] + p["b_ih"][a]
        gh = h @ p["w_hh"][a] + p["b_hh"][a]
        r = jax.nn.sigmoid(gx[:, :H] + gh[:, :H])
        z = jax.nn.sigmoid(gx[:, H:2 * H] + gh[:, H:2 * H])
        n = jnp.tanh(gx[:, 2 * H:] + r * gh[:, 2 * H:])
        h_new = (1.0 - z) * n + z * h
        h_new = ln(h_new, p["g_gru"][a], p["be_gru"][a])
        y = h_new @ p["w_mid"][a] + p["b_mid"][a]
        y = jnp.maximum(ln(y, p["g_mid"][a], p["be_mid"][a]), 0.0)
        outs.append(y @ p["w_out"][a] + p["b_out"][a])
        hs.append(h_new)
    return jnp.stack(outs, 0), jnp.stack(hs, 0)


if __name__ == "__main__":
    key = jax.random.PRNGKey(0)
    k_in, k_h, k_par = jax.random.split(key, 3)

    logical = make_logical_params(k_par)
    kparams = pack_params(logical)

    inputs = jax.random.normal(k_in, (A, B, D_IN), jnp.float32)     # per-agent inputs, stacked
    # non-zero hiddens exercise the full GRU path (GRULayer.init_hidden would be zeros)
    hiddens = 0.5 * jax.random.normal(k_h, (A, B, H), jnp.float32)

    fwd = jax.jit(functools.partial(multi_agent_forward, kparams=kparams))
    outs, new_hiddens = fwd(inputs, hiddens)
    jax.block_until_ready((outs, new_hiddens))

    ref_outs, ref_hiddens = reference_forward(inputs, hiddens, logical)
    np.testing.assert_allclose(np.asarray(outs), np.asarray(ref_outs), rtol=1e-4, atol=2e-4)
    np.testing.assert_allclose(np.asarray(new_hiddens), np.asarray(ref_hiddens), rtol=1e-4, atol=2e-4)

    assert outs.shape == (A, B, D_OUT) and new_hiddens.shape == (A, B, H)
    print("KERNEL_OK")
</pallas_src>

<mosaic_0001>
module attributes {stable_mosaic.version = 11 : i64} {
  func.func @_fused_kernel(%arg0: memref<8x32xf32, #tpu.memory_space<vmem>>, %arg1: memref<8x64xf32, #tpu.memory_space<vmem>>, %arg2: memref<8x1664xf32, #tpu.memory_space<vmem>>, %arg3: memref<32x64xf32, #tpu.memory_space<vmem>>, %arg4: memref<128x256xf32, #tpu.memory_space<vmem>>, %arg5: memref<64x64xf32, #tpu.memory_space<vmem>>, %arg6: memref<64x16xf32, #tpu.memory_space<vmem>>, %arg7: memref<8x128xf32, #tpu.memory_space<vmem>>) attributes {dimension_semantics = [], scalar_prefetch = 0 : i64, scratch_operands = 0 : i64, tpu.core_type = #tpu.core_type<tc>} {
    %c0 = arith.constant 0 : index
    %c0_0 = arith.constant 0 : index
    %0 = vector.load %arg0[%c0, %c0_0] : memref<8x32xf32, #tpu.memory_space<vmem>>, vector<8x32xf32>
    %c0_1 = arith.constant 0 : index
    %c0_2 = arith.constant 0 : index
    %1 = vector.load %arg1[%c0_1, %c0_2] : memref<8x64xf32, #tpu.memory_space<vmem>>, vector<8x64xf32>
    %c0_3 = arith.constant 0 : index
    %c0_4 = arith.constant 0 : index
    %2 = vector.load %arg2[%c0_3, %c0_4] : memref<8x1664xf32, #tpu.memory_space<vmem>>, vector<8x1664xf32>
    %3 = vector.extract_strided_slice %2 {offsets = [0, 0], sizes = [8, 32], strides = [1, 1]} : vector<8x1664xf32> to vector<8x32xf32>
    %4 = vector.extract_strided_slice %2 {offsets = [0, 128], sizes = [8, 32], strides = [1, 1]} : vector<8x1664xf32> to vector<8x32xf32>
    %cst = arith.constant dense<0.000000e+00> : vector<8xf32>
    %5 = vector.multi_reduction <add>, %0, %cst [1] : vector<8x32xf32> to vector<8xf32>
    %6 = vector.shape_cast %5 : vector<8xf32> to vector<8x1xf32>
    %7 = arith.mulf %0, %0 : vector<8x32xf32>
    %cst_5 = arith.constant dense<0.000000e+00> : vector<8xf32>
    %8 = vector.multi_reduction <add>, %7, %cst_5 [1] : vector<8x32xf32> to vector<8xf32>
    %9 = vector.shape_cast %8 : vector<8xf32> to vector<8x1xf32>
    %cst_6 = arith.constant 6.250000e-02 : f32
    %10 = vector.broadcast %cst_6 : f32 to vector<8x1xf32>
    %11 = arith.mulf %6, %10 : vector<8x1xf32>
    %cst_7 = arith.constant 6.250000e-02 : f32
    %12 = vector.broadcast %cst_7 : f32 to vector<8x1xf32>
    %13 = arith.mulf %9, %12 : vector<8x1xf32>
    %14 = arith.mulf %11, %11 : vector<8x1xf32>
    %15 = arith.subf %13, %14 : vector<8x1xf32>
    %cst_8 = arith.constant 9.99999974E-6 : f32
    %16 = vector.broadcast %cst_8 : f32 to vector<8x1xf32>
    %17 = arith.addf %15, %16 : vector<8x1xf32>
    %18 = math.rsqrt %17 : vector<8x1xf32>
    %19 = vector.broadcast %18 : vector<8x1xf32> to vector<8x32xf32>
    %20 = arith.mulf %3, %19 : vector<8x32xf32>
    %21 = arith.mulf %0, %20 : vector<8x32xf32>
    %22 = vector.broadcast %11 : vector<8x1xf32> to vector<8x32xf32>
    %23 = arith.mulf %22, %20 : vector<8x32xf32>
    %24 = arith.subf %4, %23 : vector<8x32xf32>
    %25 = arith.addf %21, %24 : vector<8x32xf32>
    %c0_9 = arith.constant 0 : index
    %c0_10 = arith.constant 0 : index
    %26 = vector.load %arg3[%c0_9, %c0_10] : memref<32x64xf32, #tpu.memory_space<vmem>>, vector<32x64xf32>
    %cst_11 = arith.constant dense<0.000000e+00> : vector<8x64xf32>
    %27 = tpu.matmul %25, %26, %cst_11 {dimension_numbers = #tpu.dot_dimension_numbers<[1], [0], [0], [1], [0, 0, 1, 1], [], []>} : vector<8x32xf32>, vector<32x64xf32>, vector<8x64xf32> -> vector<8x64xf32>
    %28 = vector.extract_strided_slice %2 {offsets = [0, 256], sizes = [8, 64], strides = [1, 1]} : vector<8x1664xf32> to vector<8x64xf32>
    %29 = arith.addf %27, %28 : vector<8x64xf32>
    %30 = vector.extract_strided_slice %2 {offsets = [0, 384], sizes = [8, 64], strides = [1, 1]} : vector<8x1664xf32> to vector<8x64xf32>
    %31 = vector.extract_strided_slice %2 {offsets = [0, 512], sizes = [8, 64], strides = [1, 1]} : vector<8x1664xf32> to vector<8x64xf32>
    %cst_12 = arith.constant dense<0.000000e+00> : vector<8xf32>
    %32 = vector.multi_reduction <add>, %29, %cst_12 [1] : vector<8x64xf32> to vector<8xf32>
    %33 = vector.shape_cast %32 : vector<8xf32> to vector<8x1xf32>
    %34 = arith.mulf %29, %29 : vector<8x64xf32>
    %cst_13 = arith.constant dense<0.000000e+00> : vector<8xf32>
    %35 = vector.multi_reduction <add>, %34, %cst_13 [1] : vector<8x64xf32> to vector<8xf32>
    %36 = vector.shape_cast %35 : vector<8xf32> to vector<8x1xf32>
    %cst_14 = arith.constant 3.125000e-02 : f32
    %37 = vector.broadcast %cst_14 : f32 to vector<8x1xf32>
    %38 = arith.mulf %33, %37 : vector<8x1xf32>
    %cst_15 = arith.constant 3.125000e-02 : f32
    %39 = vector.broadcast %cst_15 : f32 to vector<8x1xf32>
    %40 = arith.mulf %36, %39 : vector<8x1xf32>
    %41 = arith.mulf %38, %38 : vector<8x1xf32>
    %42 = arith.subf %40, %41 : vector<8x1xf32>
    %cst_16 = arith.constant 9.99999974E-6 : f32
    %43 = vector.broadcast %cst_16 : f32 to vector<8x1xf32>
    %44 = arith.addf %42, %43 : vector<8x1xf32>
    %45 = math.rsqrt %44 : vector<8x1xf32>
    %46 = vector.broadcast %45 : vector<8x1xf32> to vector<8x64xf32>
    %47 = arith.mulf %30, %46 : vector<8x64xf32>
    %48 = arith.mulf %29, %47 : vector<8x64xf32>
    %49 = vector.broadcast %38 : vector<8x1xf32> to vector<8x64xf32>
    %50 = arith.mulf %49, %47 : vector<8x64xf32>
    %51 = arith.subf %31, %50 : vector<8x64xf32>
    %52 = arith.addf %48, %51 : vector<8x64xf32>
    %cst_17 = arith.constant 0.000000e+00 : f32
    %53 = vector.broadcast %cst_17 : f32 to vector<8x64xf32>
    %54 = arith.maximumf %52, %53 : vector<8x64xf32>
    %55 = tpu.concatenate %54, %1 in 1 : vector<8x64xf32>, vector<8x64xf32> -> vector<8x128xf32>
    %c0_18 = arith.constant 0 : index
    %c0_19 = arith.constant 0 : index
    %56 = vector.load %arg4[%c0_18, %c0_19] : memref<128x256xf32, #tpu.memory_space<vmem>>, vector<128x256xf32>
    %cst_20 = arith.constant dense<0.000000e+00> : vector<8x256xf32>
    %57 = tpu.matmul %55, %56, %cst_20 {dimension_numbers = #tpu.dot_dimension_numbers<[1], [0], [0], [1], [0, 0, 1, 1], [], []>} : vector<8x128xf32>, vector<128x256xf32>, vector<8x256xf32> -> vector<8x256xf32>
    %58 = vector.extract_strided_slice %2 {offsets = [0, 640], sizes = [8, 256], strides = [1, 1]} : vector<8x1664xf32> to vector<8x256xf32>
    %59 = arith.addf %57, %58 : vector<8x256xf32>
    %60 = vector.extract_strided_slice %59 {offsets = [0, 0], sizes = [8, 64], strides = [1, 1]} : vector<8x256xf32> to vector<8x64xf32>
    %61 = arith.negf %60 : vector<8x64xf32>
    %62 = math.exp %61 : vector<8x64xf32>
    %cst_21 = arith.constant 1.000000e+00 : f32
    %63 = vector.broadcast %cst_21 : f32 to vector<8x64xf32>
    %64 = arith.addf %63, %62 : vector<8x64xf32>
    %65 = arith.divf %63, %64 : vector<8x64xf32>
    %66 = vector.extract_strided_slice %59 {offsets = [0, 64], sizes = [8, 64], strides = [1, 1]} : vector<8x256xf32> to vector<8x64xf32>
    %67 = arith.negf %66 : vector<8x64xf32>
    %68 = math.exp %67 : vector<8x64xf32>
    %cst_22 = arith.constant 1.000000e+00 : f32
    %69 = vector.broadcast %cst_22 : f32 to vector<8x64xf32>
    %70 = arith.addf %69, %68 : vector<8x64xf32>
    %71 = arith.divf %69, %70 : vector<8x64xf32>
    %72 = vector.extract_strided_slice %59 {offsets = [0, 128], sizes = [8, 64], strides = [1, 1]} : vector<8x256xf32> to vector<8x64xf32>
    %73 = vector.extract_strided_slice %59 {offsets = [0, 192], sizes = [8, 64], strides = [1, 1]} : vector<8x256xf32> to vector<8x64xf32>
    %74 = arith.mulf %65, %73 : vector<8x64xf32>
    %75 = arith.addf %72, %74 : vector<8x64xf32>
    %76 = math.tanh %75 : vector<8x64xf32>
    %cst_23 = arith.constant 1.000000e+00 : f32
    %77 = vector.broadcast %cst_23 : f32 to vector<8x64xf32>
    %78 = arith.subf %77, %71 : vector<8x64xf32>
    %79 = arith.mulf %78, %76 : vector<8x64xf32>
    %80 = arith.mulf %71, %1 : vector<8x64xf32>
    %81 = arith.addf %79, %80 : vector<8x64xf32>
    %82 = vector.extract_strided_slice %2 {offsets = [0, 896], sizes = [8, 64], strides = [1, 1]} : vector<8x1664xf32> to vector<8x64xf32>
    %83 = vector.extract_strided_slice %2 {offsets = [0, 1024], sizes = [8, 64], strides = [1, 1]} : vector<8x1664xf32> to vector<8x64xf32>
    %cst_24 = arith.constant dense<0.000000e+00> : vector<8xf32>
    %84 = vector.multi_reduction <add>, %81, %cst_24 [1] : vector<8x64xf32> to vector<8xf32>
    %85 = vector.shape_cast %84 : vector<8xf32> to vector<8x1xf32>
    %86 = arith.mulf %81, %81 : vector<8x64xf32>
    %cst_25 = arith.constant dense<0.000000e+00> : vector<8xf32>
    %87 = vector.multi_reduction <add>, %86, %cst_25 [1] : vector<8x64xf32> to vector<8xf32>
    %88 = vector.shape_cast %87 : vector<8xf32> to vector<8x1xf32>
    %cst_26 = arith.constant 3.125000e-02 : f32
    %89 = vector.broadcast %cst_26 : f32 to vector<8x1xf32>
    %90 = arith.mulf %85, %89 : vector<8x1xf32>
    %cst_27 = arith.constant 3.125000e-02 : f32
    %91 = vector.broadcast %cst_27 : f32 to vector<8x1xf32>
    %92 = arith.mulf %88, %91 : vector<8x1xf32>
    %93 = arith.mulf %90, %90 : vector<8x1xf32>
    %94 = arith.subf %92, %93 : vector<8x1xf32>
    %cst_28 = arith.constant 9.99999974E-6 : f32
    %95 = vector.broadcast %cst_28 : f32 to vector<8x1xf32>
    %96 = arith.addf %94, %95 : vector<8x1xf32>
    %97 = math.rsqrt %96 : vector<8x1xf32>
    %98 = vector.broadcast %97 : vector<8x1xf32> to vector<8x64xf32>
    %99 = arith.mulf %82, %98 : vector<8x64xf32>
    %100 = arith.mulf %81, %99 : vector<8x64xf32>
    %101 = vector.broadcast %90 : vector<8x1xf32> to vector<8x64xf32>
    %102 = arith.mulf %101, %99 : vector<8x64xf32>
    %103 = arith.subf %83, %102 : vector<8x64xf32>
    %104 = arith.addf %100, %103 : vector<8x64xf32>
    %c0_29 = arith.constant 0 : index
    %c0_30 = arith.constant 0 : index
    %105 = vector.load %arg5[%c0_29, %c0_30] : memref<64x64xf32, #tpu.memory_space<vmem>>, vector<64x64xf32>
    %cst_31 = arith.constant dense<0.000000e+00> : vector<8x64xf32>
    %106 = tpu.matmul %104, %105, %cst_31 {dimension_numbers = #tpu.dot_dimension_numbers<[1], [0], [0], [1], [0, 0, 1, 1], [], []>} : vector<8x64xf32>, vector<64x64xf32>, vector<8x64xf32> -> vector<8x64xf32>
    %107 = vector.extract_strided_slice %2 {offsets = [0, 1152], sizes = [8, 64], strides = [1, 1]} : vector<8x1664xf32> to vector<8x64xf32>
    %108 = arith.addf %106, %107 : vector<8x64xf32>
    %109 = vector.extract_strided_slice %2 {offsets = [0, 1280], sizes = [8, 64], strides = [1, 1]} : vector<8x1664xf32> to vector<8x64xf32>
    %110 = vector.extract_strided_slice %2 {offsets = [0, 1408], sizes = [8, 64], strides = [1, 1]} : vector<8x1664xf32> to vector<8x64xf32>
    %cst_32 = arith.constant dense<0.000000e+00> : vector<8xf32>
    %111 = vector.multi_reduction <add>, %108, %cst_32 [1] : vector<8x64xf32> to vector<8xf32>
    %112 = vector.shape_cast %111 : vector<8xf32> to vector<8x1xf32>
    %113 = arith.mulf %108, %108 : vector<8x64xf32>
    %cst_33 = arith.constant dense<0.000000e+00> : vector<8xf32>
    %114 = vector.multi_reduction <add>, %113, %cst_33 [1] : vector<8x64xf32> to vector<8xf32>
    %115 = vector.shape_cast %114 : vector<8xf32> to vector<8x1xf32>
    %cst_34 = arith.constant 3.125000e-02 : f32
    %116 = vector.broadcast %cst_34 : f32 to vector<8x1xf32>
    %117 = arith.mulf %112, %116 : vector<8x1xf32>
    %cst_35 = arith.constant 3.125000e-02 : f32
    %118 = vector.broadcast %cst_35 : f32 to vector<8x1xf32>
    %119 = arith.mulf %115, %118 : vector<8x1xf32>
    %120 = arith.mulf %117, %117 : vector<8x1xf32>
    %121 = arith.subf %119, %120 : vector<8x1xf32>
    %cst_36 = arith.constant 9.99999974E-6 : f32
    %122 = vector.broadcast %cst_36 : f32 to vector<8x1xf32>
    %123 = arith.addf %121, %122 : vector<8x1xf32>
    %124 = math.rsqrt %123 : vector<8x1xf32>
    %125 = vector.broadcast %124 : vector<8x1xf32> to vector<8x64xf32>
    %126 = arith.mulf %109, %125 : vector<8x64xf32>
    %127 = arith.mulf %108, %126 : vector<8x64xf32>
    %128 = vector.broadcast %117 : vector<8x1xf32> to vector<8x64xf32>
    %129 = arith.mulf %128, %126 : vector<8x64xf32>
    %130 = arith.subf %110, %129 : vector<8x64xf32>
    %131 = arith.addf %127, %130 : vector<8x64xf32>
    %cst_37 = arith.constant 0.000000e+00 : f32
    %132 = vector.broadcast %cst_37 : f32 to vector<8x64xf32>
    %133 = arith.maximumf %131, %132 : vector<8x64xf32>
    %c0_38 = arith.constant 0 : index
    %c0_39 = arith.constant 0 : index
    %134 = vector.load %arg6[%c0_38, %c0_39] : memref<64x16xf32, #tpu.memory_space<vmem>>, vector<64x16xf32>
    %cst_40 = arith.constant dense<0.000000e+00> : vector<8x16xf32>
    %135 = tpu.matmul %133, %134, %cst_40 {dimension_numbers = #tpu.dot_dimension_numbers<[1], [0], [0], [1], [0, 0, 1, 1], [], []>} : vector<8x64xf32>, vector<64x16xf32>, vector<8x16xf32> -> vector<8x16xf32>
    %136 = vector.extract_strided_slice %2 {offsets = [0, 1536], sizes = [8, 16], strides = [1, 1]} : vector<8x1664xf32> to vector<8x16xf32>
    %137 = arith.addf %135, %136 : vector<8x16xf32>
    %cst_41 = arith.constant 0.000000e+00 : f32
    %138 = vector.broadcast %cst_41 : f32 to vector<8x48xf32>
    %139 = tpu.concatenate %104, %137, %138 in 1 : vector<8x64xf32>, vector<8x16xf32>, vector<8x48xf32> -> vector<8x128xf32>
    %c0_42 = arith.constant 0 : index
    %c0_43 = arith.constant 0 : index
    %140 = vector.load %arg7[%c0_42, %c0_43] : memref<8x128xf32, #tpu.memory_space<vmem>>, vector<8x128xf32>
    tpu.vector_store %arg7[%c0_42, %c0_43], %139 {strides = array<i32>} : memref<8x128xf32, #tpu.memory_space<vmem>>, vector<8x128xf32>,
    return
  }
}

</mosaic_0001>

<bundles_post_ra>
// kernel: multi_agent_forward.1
= control target key start
LH: loop header
LB: loop body
LE: loop exit
PB: predicated region body
PF: predicated region fallthrough
CT: control target
= control target key end

     0   :  { %12 = vsyncpa [#allocation3], 0  ;;  %s1041_s0 = inlined_call_operand.vmem [shape: f32[8,32], index: 0, kind: input, shape index: {}]   ;;  %s1042_s1 = inlined_call_operand.vmem [shape: f32[8,64], index: 1, kind: input, shape index: {}]   ;;  %s1043_s2 = inlined_call_operand.vmem [shape: f32[8,1664], index: 2, kind: input, shape index: {}]   ;;  %s1044_s3 = inlined_call_operand.hbm [shape: f32[32,64], index: 3, kind: input, shape index: {}]   ;;  %s1045_s4 = inlined_call_operand.hbm [shape: f32[128,256], index: 4, kind: input, shape index: {}]   ;;  %s1046_s5 = inlined_call_operand.hbm [shape: f32[64,64], index: 5, kind: input, shape index: {}]   ;;  %s1047_s6 = inlined_call_operand.hbm [shape: f32[64,16], index: 6, kind: input, shape index: {}]   ;;  %s1048_s7 = inlined_call_operand.vmem [shape: f32[8,128], index: 7, kind: output, shape index: {}]  }
   0x1   :  { %13 = vsyncpa [#allocation5], 0 }
   0x2   :  { %14 = vsyncpa [#allocation8], 0  ;;  %s832_s24 = smov [#allocation4]   ;;  %s738_s28 = scalar_lea.hbm %s1045_s4, 4096 }
   0x3   :  { %s38_s25 = sshll.u32 %s832_s24, 4  ;;  %p739_p0 = scmp.ne.s32.totalorder %s1045_s4, %s738_s28  ;;  %s39_s25 = int_to_ptr.vmem [resolvable:$true] %s38_s25 }
   0x4   :  { %p742_p1 = scmp.lt.u32.totalorder %s738_s28, %s1045_s4 }
   0x6   :  { %p744_p2 = pnand %p742_p1, %p739_p0 }
   0x8   :  { %747 = shalt.err (!%p744_p2)
}
   0x9   :  { %s748_s10 = scalar_lea.vmem %s39_s25, 4096  ;;  %p753_p4 = scmp.lt.s32.totalorder %s39_s25, %s39_s25 }
   0xa   :  { %p749_p3 = scmp.ne.s32.totalorder %s39_s25, %s748_s10  ;;  %p754_p5 = scmp.lt.s32.totalorder %s748_s10, %s748_s10 }
   0xc   :  { %p755_p6 = por %p754_p5, %p753_p4 }
   0xe   :  { %p756_p7 = pnand %p755_p6, %p749_p3 }
  0x10   :  { %759 = shalt.err (!%p756_p7)
}
  0x11   :  { %s833_s11 = smov 256   ;;  %s834_s12 = smov 16  }
  0x12   :  { %44 = dma.hbm_to_vmem [thread:$0]  %s1045_s4, 4096, %s39_s25, [#allocation5], %s833_s11, %s833_s11, %s834_s12  }
  0x13   :  { %s835_s15 = smov [#allocation2]   ;;  %s760_s19 = scalar_lea.hbm %s1044_s3, 512 }
  0x14   :  { %s26_s16 = sshll.u32 %s835_s15, 4  ;;  %p761_p8 = scmp.ne.s32.totalorder %s1044_s3, %s760_s19  ;;  %s27_s16 = int_to_ptr.vmem [resolvable:$true] %s26_s16 }
  0x15   :  { %p764_p9 = scmp.lt.u32.totalorder %s760_s19, %s1044_s3 }
  0x17   :  { %p766_p10 = pnand %p764_p9, %p761_p8 }
  0x19   :  { %769 = shalt.err (!%p766_p10)
}
  0x1a   :  { %s770_s24 = scalar_lea.vmem %s27_s16, 512  ;;  %p775_p12 = scmp.lt.s32.totalorder %s27_s16, %s27_s16 }
  0x1b   :  { %p771_p11 = scmp.ne.s32.totalorder %s27_s16, %s770_s24  ;;  %p776_p13 = scmp.lt.s32.totalorder %s770_s24, %s770_s24 }
  0x1d   :  { %p777_p0 = por %p776_p13, %p775_p12 }
  0x1f   :  { %p778_p1 = pnand %p777_p0, %p771_p11 }
  0x21   :  { %781 = shalt.err (!%p778_p1)
}
  0x22   :  { %s836_s4 = smov 128   ;;  %s837_s25 = smov 8  }
  0x23   :  { %32 = dma.hbm_to_vmem [thread:$0]  %s1044_s3, 512, %s27_s16, [#allocation3], %s836_s4, %s836_s4, %s837_s25  }
  0x24   :  { %s838_s28 = smov [#allocation6]   ;;  %s839_s30 = smov [#allocation7]  }
  0x25   :  { %s50_s29 = sshll.u32 %s838_s28, 4  ;;  %s62_s8 = sshll.u32 %s839_s30, 4  ;;  %s51_s29 = int_to_ptr.vmem [resolvable:$true] %s50_s29  ;;  %s911_s8 = int_to_ptr.vmem [resolvable:$true] %s62_s8 }
  0x26   :  { %s782_s11 = scalar_lea.hbm %s1046_s5, 1024 }
  0x27   :  { %p783_p2 = scmp.ne.s32.totalorder %s1046_s5, %s782_s11  ;;  %p786_p3 = scmp.lt.u32.totalorder %s782_s11, %s1046_s5 }
  0x29   :  { %p788_p4 = pnand %p786_p3, %p783_p2 }
  0x2b   :  { %791 = shalt.err (!%p788_p4)
}
  0x2c   :  { %s792_s3 = scalar_lea.vmem %s51_s29, 1024  ;;  %p797_p6 = scmp.lt.s32.totalorder %s51_s29, %s51_s29 }
  0x2d   :  { %p793_p5 = scmp.ne.s32.totalorder %s51_s29, %s792_s3  ;;  %p798_p7 = scmp.lt.s32.totalorder %s792_s3, %s792_s3 }
  0x2f   :  { %p799_p8 = por %p798_p7, %p797_p6 }
  0x31   :  { %p800_p9 = pnand %p799_p8, %p793_p5 }
  0x33   :  { %803 = shalt.err (!%p800_p9)
}
  0x34   :  { %56 = dma.hbm_to_vmem [thread:$0]  %s1046_s5, 1024, %s51_s29, [#allocation5], %s836_s4, %s836_s4, %s837_s25  }
  0x35   :  { %s804_s20 = scalar_lea.hbm %s1047_s6, 1024 }
  0x36   :  { %p805_p10 = scmp.ne.s32.totalorder %s1047_s6, %s804_s20  ;;  %p808_p11 = scmp.lt.u32.totalorder %s804_s20, %s1047_s6 }
  0x38   :  { %p810_p12 = pnand %p808_p11, %p805_p10 }
  0x3a   :  { %813 = shalt.err (!%p810_p12)
}
  0x3b   :  { %s814_s26 = scalar_lea.vmem %s911_s8, 1024  ;;  %p819_p0 = scmp.lt.s32.totalorder %s911_s8, %s911_s8 }
  0x3c   :  { %p815_p13 = scmp.ne.s32.totalorder %s911_s8, %s814_s26  ;;  %p820_p1 = scmp.lt.s32.totalorder %s814_s26, %s814_s26 }
  0x3e   :  { %p821_p2 = por %p820_p1, %p819_p0 }
  0x40   :  { %p822_p3 = pnand %p821_p2, %p815_p13 }
  0x42   :  { %825 = shalt.err (!%p822_p3)
}
  0x43   :  { %68 = dma.hbm_to_vmem [thread:$0]  %s1047_s6, 1024, %s911_s8, [#allocation8], %s836_s4, %s836_s4, %s837_s25  }
  0x44   :  { %826 = dma.done.wait [#allocation3], 512  }
  0x45   :  { %827 = vsyncadd [#allocation3], 4294966784 }
  0x46   :  { %828 = dma.done.wait [#allocation5], 5120  }
  0x47   :  { %829 = vsyncadd [#allocation5], 4294962176 }
  0x48   :  { %830 = dma.done.wait [#allocation8], 1024  }
  0x49   :  { %831 = vsyncadd [#allocation8], 4294966272  ;;  %vm96_vm0 = vcmask 261120   ;;  %v81_v0 = vld [vmem:[%s1041_s0] sm:$0xff]  ;;  %v116_v5 = vld [vmem:[#allocation2 + $0x8] sm:$0xff]  ;;  %v840_v7 = vmov 0.0|0.0  }
  0x4a   :  { %v97_v1 = vsel %vm96_vm0, %v81_v0, 0.0  ;;  %v100_v2 = vmul.f32 %v81_v0, %v81_v0  ;;  %v115_v4 = vld [vmem:[#allocation2] sm:$0xff]  ;;  %v117_v6 = vld [vmem:[#allocation2 + $0x10] sm:$0xff]  ;;  %650 = vmatprep.subr.bf16.mxu0 %v840_v7  ;;  %v118_v9 = vld [vmem:[#allocation2 + $0x18] sm:$0xff]  ;;  %vm841_vm1 = vmmov 0   ;;  %v842_v10 = vmov 0.0  }
  0x4b   :  { %98 = vadd.xlane.f32.xlu0 %v97_v1  ;;  %v651_v8 = vpack.c.bf16 %v116_v5, %v115_v4  ;;  %609 = vmatprep.mubr.msk.f32.mxu0 %vm841_vm1, %v842_v10  ;;  %v654_v11 = vpack.c.bf16 %v118_v9, %v117_v6  ;;  %v83_v19 = vld [vmem:[%s1043_s2] sm:$0xff]  ;;  %v84_v22 = vld [vmem:[%s1043_s2 + $0x8] sm:$0xff]  ;;  %s843_s9 = smov 64   ;;  %v85_v28 = vld [vmem:[%s1043_s2 + $0x10] sm:$0xff]  ;;  %vm192_vm2 = vcmask 523264   ;;  %vm564_vm3 = vcmask 654336  }
  0x4c   :  { %v101_v3 = vsel %vm96_vm0, %v100_v2, 0.0  ;;  %313 = vmatprep.mubr.f32.mxu1 %v842_v10  ;;  %v82_v27 = vld [vmem:[%s1042_s1] sm:$0xff]  ;;  %v218_v35 = vld [vmem:[#allocation4 + $0x8] sm:$0xff]  ;;  %v220_v36 = vld [vmem:[#allocation4 + $0x18] sm:$0xff] }
  0x4d   :  { %652 = vmatpush3.bf16.msra.mxu0 %v651_v8  ;;  %v656_v37 = vpack.c.bf16 %v220_v36, %v218_v35  ;;  %v217_v38 = vld [vmem:[#allocation4] sm:$0xff]  ;;  %v219_v39 = vld [vmem:[#allocation4 + $0x10] sm:$0xff]  ;;  %v222_v41 = vld [vmem:[#allocation4 + $0x28] sm:$0xff] }
  0x4e   :  { %653 = vmatprep.subr.bf16.mxu0 %v840_v7  ;;  %v658_v40 = vpack.c.bf16 %v219_v39, %v217_v38  ;;  %v224_v42 = vld [vmem:[#allocation4 + $0x38] sm:$0xff]  ;;  %v221_v44 = vld [vmem:[#allocation4 + $0x20] sm:$0xff]  ;;  %v223_v45 = vld [vmem:[#allocation4 + $0x30] sm:$0xff] }
  0x4f   :  { %102 = vadd.xlane.f32.xlu0 %v101_v3  ;;  %657 = vmatprep.subr.bf16.mxu1 %v656_v37  ;;  %v660_v43 = vpack.c.bf16 %v224_v42, %v222_v41  ;;  %v662_v46 = vpack.c.bf16 %v223_v45, %v221_v44  ;;  %v226_v47 = vld [vmem:[#allocation4 + $0x48] sm:$0xff]  ;;  %v228_v48 = vld [vmem:[#allocation4 + $0x58] sm:$0xff]  ;;  %v225_v50 = vld [vmem:[#allocation4 + $0x40] sm:$0xff] }
  0x50   :  { %659 = vmatpush1.bf16.msra.mxu1 %v658_v40  ;;  %v664_v49 = vpack.c.bf16 %v228_v48, %v226_v47  ;;  %v227_v51 = vld [vmem:[#allocation4 + $0x50] sm:$0xff]  ;;  %v230_v53 = vld [vmem:[#allocation4 + $0x68] sm:$0xff]  ;;  %v232_v54 = vld [vmem:[#allocation4 + $0x78] sm:$0xff] }
  0x51   :  { %655 = vmatpush3.bf16.msra.mxu0 %v654_v11  ;;  %661 = vmatprep.subr.bf16.mxu1 %v660_v43  ;;  %v666_v52 = vpack.c.bf16 %v227_v51, %v225_v50  ;;  %v668_v55 = vpack.c.bf16 %v232_v54, %v230_v53  ;;  %v229_v56 = vld [vmem:[#allocation4 + $0x60] sm:$0xff]  ;;  %v231_v57 = vld [vmem:[#allocation4 + $0x70] sm:$0xff]  ;;  %v234_v58 = vld [vmem:[#allocation4 + $0x88] sm:$0xff] }
  0x52   :  { %688 = vmatprep.subr.bf16.mxu0 %v840_v7  ;;  %v670_v59 = vpack.c.bf16 %v231_v57, %v229_v56  ;;  %v236_v60 = vld [vmem:[#allocation4 + $0x98] sm:$0xff]  ;;  %v233_v61 = vld [vmem:[#allocation4 + $0x80] sm:$0xff]  ;;  %v235_v62 = vld [vmem:[#allocation4 + $0x90] sm:$0xff] }
  0x53   :  { %v672_v63 = vpack.c.bf16 %v236_v60, %v234_v58  ;;  %v240_v1 = vld [vmem:[#allocation4 + $0xb8] sm:$0xff]  ;;  %v674_v2 = vpack.c.bf16 %v235_v62, %v233_v61  ;;  %v237_v4 = vld [vmem:[#allocation4 + $0xa0] sm:$0xff]  ;;  %v239_v5 = vld [vmem:[#allocation4 + $0xb0] sm:$0xff] }
  0x54   :  { %663 = vmatpush1.bf16.msra.mxu1 %v662_v46  ;;  %v242_v6 = vld [vmem:[#allocation4 + $0xc8] sm:$0xff]  ;;  %v244_v8 = vld [vmem:[#allocation4 + $0xd8] sm:$0xff]  ;;  %v678_v9 = vpack.c.bf16 %v239_v5, %v237_v4  ;;  %v89_v40 = vld [vmem:[%s1043_s2 + $0x30] sm:$0xff] }
  0x55   :  { %665 = vmatprep.subr.bf16.mxu1 %v664_v49  ;;  %v680_v11 = vpack.c.bf16 %v244_v8, %v242_v6  ;;  %v375_v6 = vld [vmem:[#allocation6] sm:$0xff]  ;;  %v376_v8 = vld [vmem:[#allocation6 + $0x8] sm:$0xff] }
  0x58   :  { %667 = vmatpush1.bf16.msra.mxu1 %v666_v52 }
  0x59   :  { %669 = vmatprep.subr.bf16.mxu1 %v668_v55 }
  0x5c   :  { %671 = vmatpush1.bf16.msra.mxu1 %v670_v59 }
  0x5d   :  { %673 = vmatprep.subr.bf16.mxu1 %v672_v63 }
  0x60   :  { %675 = vmatpush1.bf16.msra.mxu1 %v674_v2 }
  0x65   :  { %213 = vrot.lane.b32.xlu0 %v82_v27, %s843_s9 }
  0xd8   :  { %v99_v12 = vpop.xlane.xlu0 %98 }
  0xd9   :  { %v104_v13 = vmul.f32 0.0625, %v99_v12  ;;  %v241_v12 = vld [vmem:[#allocation4 + $0xc0] sm:$0xff] }
  0xdb   :  { %v106_v15 = vmul.f32 %v104_v13, %v104_v13 }
  0xdc   :  { %v103_v14 = vpop.xlane.xlu0 %102 }
  0xdd   :  { %v105_v16 = vmul.f32 0.0625, %v103_v14  ;;  %v246_v14 = vld [vmem:[#allocation4 + $0xe8] sm:$0xff] }
  0xdf   :  { %v107_v17 = vsub.f32 %v105_v16, %v106_v15  ;;  %v248_v15 = vld [vmem:[#allocation4 + $0xf8] sm:$0xff] }
  0xe0   :  { %v214_v37 = vpop.permute.xlu0 %213 }
  0xe1   :  { %v108_v18 = vadd.f32 1e-05, %v107_v17  ;;  %v684_v17 = vpack.c.bf16 %v248_v15, %v246_v14 }
  0xe3   :  { %724 = vrsqrt.f32 %v108_v18  ;;  %v245_v18 = vld [vmem:[#allocation4 + $0xe0] sm:$0xff] }
  0xed   :  { %v725_v20 = vpop.eup %724 }
  0xee   :  { %v110_v21 = vmul.f32 %v725_v20, %v83_v19  ;;  %v247_v19 = vld [vmem:[#allocation4 + $0xf0] sm:$0xff] }
  0xef   :  { %v686_v20 = vpack.c.bf16 %v247_v19, %v245_v18  ;;  %v91_v19 = vld [vmem:[%s1043_s2 + $0x40] sm:$0xff] }
  0xf0   :  { %v112_v23 = vmul.f32 %v110_v21, %v104_v13  ;;  %v111_v24 = vmul.f32 %v110_v21, %v81_v0  ;;  %v238_v0 = vld [vmem:[#allocation4 + $0xa8] sm:$0xff]  ;;  %v243_v13 = vld [vmem:[#allocation4 + $0xd0] sm:$0xff] }
  0xf1   :  { %v676_v3 = vpack.c.bf16 %v240_v1, %v238_v0  ;;  %v682_v16 = vpack.c.bf16 %v243_v13, %v241_v12  ;;  %v378_v12 = vld [vmem:[#allocation6 + $0x18] sm:$0xff] }
  0xf2   :  { %v113_v25 = vsub.f32 %v84_v22, %v112_v23  ;;  %v90_v13 = vld [vmem:[%s1043_s2 + $0x38] sm:$0xff] }
  0xf3   :  { %677 = vmatprep.subr.bf16.mxu1 %v676_v3 }
  0xf4   :  { %v114_v26 = vadd.f32 %v113_v25, %v111_v24  ;;  %679 = vmatpush1.bf16.msra.mxu1 %v678_v9  ;;  %v377_v9 = vld [vmem:[#allocation6 + $0x10] sm:$0xff] }
  0xf5   :  { %681 = vmatprep.subr.bf16.mxu1 %v680_v11  ;;  %v689_v11 = vpack.c.bf16 %v376_v8, %v375_v6  ;;  %v692_v14 = vpack.c.bf16 %v378_v12, %v377_v9 }
  0xf6   :  { %610 = vmatmul.mubr.msk.f32.vlgmr.msra.gmra.mrb[0].mxu0 %vm96_vm0, %v114_v26 }
  0xf7   :  { %628 = vmatprep.mubr.msk.f32.mxu0 %vm841_vm1, %v842_v10  ;;  %690 = vmatpush3.bf16.msra.mxu0 %v689_v11 }
  0xf8   :  { %683 = vmatpush1.bf16.msra.mxu1 %v682_v16  ;;  %691 = vmatprep.subr.bf16.mxu0 %v840_v7  ;;  %v379_v16 = vld [vmem:[#allocation6 + $0x20] sm:$0xff] }
  0xf9   :  { %685 = vmatprep.subr.bf16.mxu1 %v684_v17  ;;  %v380_v17 = vld [vmem:[#allocation6 + $0x28] sm:$0xff] }
  0xfb   :  { %693 = vmatpush3.bf16.msra.mxu0 %v692_v14 }
  0xfc   :  { %687 = vmatpush1.bf16.msra.mxu1 %v686_v20  ;;  %694 = vmatprep.subr.bf16.mxu0 %v840_v7 }
 0x1c9   :  { %v188_v29 = vpop.f32.mrb[0].mxu0 }
 0x1ca   :  { %v975_v30 = vadd.f32 %v188_v29, %v85_v28  ;;  %v611_v31 = vpop.f32.mrb[1].mxu0  ;;  %v86_v28 = vld [vmem:[%s1043_s2 + $0x18] sm:$0xff] }
 0x1cc   :  { %v193_v32 = vsel %vm192_vm2, %v975_v30, 0.0  ;;  %v196_v33 = vmul.f32 %v975_v30, %v975_v30 }
 0x1cd   :  { %194 = vadd.xlane.f32.xlu1 %v193_v32  ;;  %v87_v32 = vld [vmem:[%s1043_s2 + $0x20] sm:$0xff] }
 0x1ce   :  { %v197_v34 = vsel %vm192_vm2, %v196_v33, 0.0 }
 0x1d1   :  { %198 = vadd.xlane.f32.xlu1 %v197_v34 }
 0x25a   :  { %v195_v21 = vpop.xlane.xlu1 %194 }
 0x25b   :  { %v200_v22 = vmul.f32 0.03125, %v195_v21  ;;  %v695_v21 = vpack.c.bf16 %v380_v17, %v379_v16 }
 0x25d   :  { %v202_v24 = vmul.f32 %v200_v22, %v200_v22  ;;  %696 = vmatpush3.bf16.msra.mxu0 %v695_v21 }
 0x25e   :  { %v199_v23 = vpop.xlane.xlu1 %198  ;;  %697 = vmatprep.subr.bf16.mxu0 %v840_v7 }
 0x25f   :  { %v201_v25 = vmul.f32 0.03125, %v199_v23  ;;  %v382_v23 = vld [vmem:[#allocation6 + $0x38] sm:$0xff] }
 0x261   :  { %v203_v26 = vsub.f32 %v201_v25, %v202_v24 }
 0x263   :  { %v204_v27 = vadd.f32 1e-05, %v203_v26 }
 0x265   :  { %726 = vrsqrt.f32 %v204_v27 }
 0x26f   :  { %v727_v29 = vpop.eup %726 }
 0x270   :  { %v206_v31 = vmul.f32 %v727_v29, %v86_v28 }
 0x272   :  { %v208_v33 = vmul.f32 %v206_v31, %v200_v22  ;;  %v207_v34 = vmul.f32 %v206_v31, %v975_v30  ;;  %v88_v30 = vld [vmem:[%s1043_s2 + $0x28] sm:$0xff]  ;;  %v381_v22 = vld [vmem:[#allocation6 + $0x30] sm:$0xff] }
 0x273   :  { %v698_v25 = vpack.c.bf16 %v382_v23, %v381_v22 }
 0x274   :  { %v209_v35 = vsub.f32 %v87_v32, %v208_v33  ;;  %v92_v32 = vld [vmem:[%s1043_s2 + $0x48] sm:$0xff] }
 0x275   :  { %699 = vmatpush3.bf16.msra.mxu0 %v698_v25 }
 0x276   :  { %v210_v36 = vadd.f32 %v209_v35, %v207_v34  ;;  %700 = vmatprep.subr.bf16.mxu0 %v840_v7 }
 0x278   :  { %v211_v38 = vmax.f32 %v210_v36, 0.0 }
 0x27a   :  { %v216_v39 = vsel %vm192_vm2, %v211_v38, %v214_v37 }
 0x27b   :  { %314 = vmatmul.mubr.f32.vlgmr.msra.gmra.mrb[0].mxu1 %v216_v39  ;;  %v477_v39 = vld [vmem:[#allocation7] sm:$0xff] }
 0x34e   :  { %v315_v41 = vpop.f32.mrb[0].mxu1 }
 0x34f   :  { %v317_v42 = vpop.f32.mrb[1].mxu1  ;;  %v316_v44 = vadd.f32 %v315_v41, %v88_v30  ;;  %v481_v30 = vld [vmem:[#allocation7 + $0x20] sm:$0xff] }
 0x350   :  { %v318_v43 = vadd.f32 %v317_v42, %v89_v40  ;;  %v478_v40 = vld [vmem:[#allocation7 + $0x8] sm:$0xff]  ;;  %v480_v42 = vld [vmem:[#allocation7 + $0x18] sm:$0xff] }
 0x351   :  { %v575_v45 = vmul.f32 -1.442695, %v316_v44  ;;  %v701_v41 = vpack.c.bf16 %v478_v40, %v477_v39  ;;  %v482_v44 = vld [vmem:[#allocation7 + $0x28] sm:$0xff] }
 0x352   :  { %327 = vrot.lane.b32.xlu1 %v318_v43, %s843_s9 }
 0x353   :  { %728 = vpow2.f32 %v575_v45  ;;  %v707_v45 = vpack.c.bf16 %v482_v44, %v481_v30 }
 0x35d   :  { %v729_v46 = vpop.eup %728 }
 0x35e   :  { %v323_v47 = vadd.f32 1.0, %v729_v46  ;;  %v483_v46 = vld [vmem:[#allocation7 + $0x30] sm:$0xff] }
 0x360   :  { %730 = vrcp.f32 %v323_v47  ;;  %v484_v47 = vld [vmem:[#allocation7 + $0x38] sm:$0xff] }
 0x36a   :  { %v731_v48 = vpop.eup %730 }
 0x36b   :  { %v333_v53 = vsub.f32 1.0, %v731_v48  ;;  %v339_v55 = vmul.f32 %v731_v48, %v214_v37 }
 0x3c4   :  { %v328_v49 = vpop.permute.xlu1 %327 }
 0x3c5   :  { %v330_v50 = vmul.f32 %v731_v48, %v328_v49  ;;  %v710_v48 = vpack.c.bf16 %v484_v47, %v483_v46 }
 0x3c7   :  { %v331_v51 = vadd.f32 %v330_v50, %v318_v43 }
 0x3c9   :  { %732 = vtanh.f32 %v331_v51 }
 0x3d3   :  { %v733_v52 = vpop.eup %732 }
 0x3d4   :  { %335 = vrot.lane.b32.xlu1 %v733_v52, %s843_s9 }
 0x446   :  { %v336_v54 = vpop.permute.xlu1 %335 }
 0x447   :  { %v338_v56 = vmul.f32 %v336_v54, %v333_v53 }
 0x449   :  { %v340_v57 = vadd.f32 %v339_v55, %v338_v56  ;;  %v93_v56 = vld [vmem:[%s1043_s2 + $0x50] sm:$0xff] }
 0x44b   :  { %342 = vrot.lane.b32.xlu1 %v340_v57, %s843_s9  ;;  %v348_v58 = vmul.f32 %v340_v57, %v340_v57 }
 0x44d   :  { %350 = vrot.lane.b32.xlu0 %v348_v58, %s843_s9 }
 0x4bd   :  { %v343_v59 = vpop.permute.xlu1 %342 }
 0x4be   :  { %v345_v60 = vsel %vm192_vm2, %v343_v59, 0.0  ;;  %v94_v59 = vld [vmem:[%s1043_s2 + $0x58] sm:$0xff] }
 0x4bf   :  { %346 = vadd.xlane.f32.xlu1 %v345_v60  ;;  %v351_v61 = vpop.permute.xlu0 %350 }
 0x4c0   :  { %v353_v62 = vsel %vm192_vm2, %v351_v61, 0.0 }
 0x4c1   :  { %354 = vadd.xlane.f32.xlu0 %v353_v62 }
 0x54c   :  { %v347_v63 = vpop.xlane.xlu1 %346 }
 0x54d   :  { %v356_v0 = vmul.f32 0.03125, %v347_v63 }
 0x54e   :  { %v355_v1 = vpop.xlane.xlu0 %354 }
 0x54f   :  { %v358_v2 = vmul.f32 %v356_v0, %v356_v0  ;;  %v357_v3 = vmul.f32 0.03125, %v355_v1 }
 0x551   :  { %v359_v4 = vsub.f32 %v357_v3, %v358_v2 }
 0x553   :  { %v360_v5 = vadd.f32 1e-05, %v359_v4 }
 0x555   :  { %734 = vrsqrt.f32 %v360_v5 }
 0x55f   :  { %v735_v15 = vpop.eup %734 }
 0x560   :  { %v362_v18 = vmul.f32 %v735_v15, %v90_v13 }
 0x562   :  { %364 = vrot.lane.b32.xlu0 %v362_v18, %s843_s9  ;;  %v368_v20 = vmul.f32 %v362_v18, %v356_v0  ;;  %v95_v0 = vld [vmem:[%s1043_s2 + $0x60] sm:$0xff] }
 0x564   :  { %v369_v24 = vsub.f32 %v91_v19, %v368_v20 }
 0x566   :  { %371 = vrot.lane.b32.xlu1 %v369_v24, %s843_s9 }
 0x5d4   :  { %v365_v26 = vpop.permute.xlu0 %364 }
 0x5d5   :  { %v367_v27 = vmul.f32 %v365_v26, %v340_v57 }
 0x5d8   :  { %v372_v28 = vpop.permute.xlu1 %371 }
 0x5d9   :  { %v374_v29 = vadd.f32 %v372_v28, %v367_v27 }
 0x5db   :  { %384 = vrot.lane.b32.xlu1 %v374_v29, %s843_s9 }
 0x64d   :  { %v385_v31 = vpop.permute.xlu1 %384 }
 0x64e   :  { %629 = vmatmul.mubr.msk.f32.vlgmr.msra.gmra.mrb[2].mxu0 %vm192_vm2, %v385_v31 }
 0x64f   :  { %647 = vmatprep.mubr.msk.f32.mxu0 %vm841_vm1, %v842_v10  ;;  %702 = vmatpush3.bf16.msra.mxu0 %v701_v41  ;;  %v479_v10 = vld [vmem:[#allocation7 + $0x10] sm:$0xff] }
 0x650   :  { %703 = vmatprep.subr.bf16.mxu0 %v840_v7  ;;  %v704_v43 = vpack.c.bf16 %v480_v42, %v479_v10 }
 0x653   :  { %705 = vmatpush3.bf16.msra.mxu0 %v704_v43 }
 0x654   :  { %706 = vmatprep.subr.bf16.mxu0 %v840_v7 }
 0x657   :  { %708 = vmatpush3.bf16.msra.mxu0 %v707_v45 }
 0x658   :  { %709 = vmatprep.subr.bf16.mxu0 %v840_v7 }
 0x65b   :  { %711 = vmatpush3.bf16.msra.mxu0 %v710_v48 }
 0x721   :  { %v454_v33 = vpop.f32.mrb[2].mxu0 }
 0x722   :  { %v455_v34 = vadd.f32 %v454_v33, %v92_v32  ;;  %v630_v35 = vpop.f32.mrb[3].mxu0 }
 0x724   :  { %v458_v36 = vsel %vm192_vm2, %v455_v34, 0.0  ;;  %v461_v37 = vmul.f32 %v455_v34, %v455_v34 }
 0x725   :  { %459 = vadd.xlane.f32.xlu0 %v458_v36 }
 0x726   :  { %v462_v38 = vsel %vm192_vm2, %v461_v37, 0.0 }
 0x727   :  { %463 = vadd.xlane.f32.xlu1 %v462_v38 }
 0x7b2   :  { %v460_v49 = vpop.xlane.xlu0 %459 }
 0x7b3   :  { %v465_v50 = vmul.f32 0.03125, %v460_v49 }
 0x7b4   :  { %v464_v51 = vpop.xlane.xlu1 %463 }
 0x7b5   :  { %v467_v52 = vmul.f32 %v465_v50, %v465_v50  ;;  %v466_v53 = vmul.f32 0.03125, %v464_v51 }
 0x7b7   :  { %v468_v54 = vsub.f32 %v466_v53, %v467_v52 }
 0x7b9   :  { %v469_v55 = vadd.f32 1e-05, %v468_v54 }
 0x7bb   :  { %736 = vrsqrt.f32 %v469_v55 }
 0x7c5   :  { %v737_v57 = vpop.eup %736 }
 0x7c6   :  { %v471_v58 = vmul.f32 %v737_v57, %v93_v56 }
 0x7c8   :  { %v473_v7 = vmul.f32 %v471_v58, %v465_v50  ;;  %v472_v60 = vmul.f32 %v471_v58, %v455_v34 }
 0x7ca   :  { %v474_v61 = vsub.f32 %v94_v59, %v473_v7 }
 0x7cc   :  { %v475_v62 = vadd.f32 %v474_v61, %v472_v60 }
 0x7ce   :  { %v476_v63 = vmax.f32 %v475_v62, 0.0 }
 0x7d0   :  { %648 = vmatmul.mubr.msk.f32.vlgmr.msra.gmra.mrb[4].mxu0 %vm192_vm2, %v476_v63 }
 0x8a3   :  { %v554_v1 = vpop.f32.mrb[4].mxu0 }
 0x8a4   :  { %v555_v2 = vadd.f32 %v554_v1, %v95_v0  ;;  %v649_v3 = vpop.f32.mrb[5].mxu0 }
 0x8a6   :  { %560 = vrot.lane.b32.xlu0 %v555_v2, %s843_s9 }
 0x918   :  { %v561_v4 = vpop.permute.xlu0 %560 }
 0x919   :  { %v563_v5 = vsel %vm192_vm2, %v385_v31, %v561_v4 }
 0x91a   :  { %v565_v6 = vsel %vm564_vm3, %v563_v5, 0.0 }
 0x91b   :  { %566 = vst [vmem:[%s1048_s7] sm:$0xff] %v565_v6 }
 0x91c   :  { %571 = vsyncpa [#allocation3], 1 }
 0x91d   :  { %572 = vsyncpa [#allocation5], 1 }
 0x91e   :  { %573 = vsyncpa [#allocation8], 1 }

</bundles_post_ra>
